<compile_context>
chip_gen: v5e
topology: v5e:2x2
jax: 0.10.0
libtpu: 0.0.40
codegen_flags: <defaults>
</compile_context>

<pallas_src>
import jax
import jax.numpy as jnp
from jax.experimental import pallas as pl
from jax.experimental.pallas import tpu as pltpu

IN_FEATURES = 10
OUT_FEATURES = 1

_LANE = 128        # lane width of a vreg
_MAX_TB = 1024     # max batch (lane) tile per grid step


def _round_up(n, m):
    return ((n + m - 1) // m) * m


def _fused_linear_kernel(bias_ref, x1t_ref, x2t_ref, w1_ref, w2_ref, o_ref):
    """o[1, TB] = sum_f(x1t*w1 + x2t*w2, axis=features) + fused_bias.

    x1t_ref / x2t_ref : [IN, TB]  features on sublanes, batch on lanes
    w1_ref  / w2_ref  : [IN, 1]   broadcast across the lane axis
    bias_ref          : SMEM f32[1], holds b1 + b2 + x3
    o_ref             : [1, TB]   lane-dense output row
    """
    s = x1t_ref[...] * w1_ref[...] + x2t_ref[...] * w2_ref[...]   # VPU
    o_ref[...] = jnp.sum(s, axis=0, keepdims=True) + bias_ref[0]  # XLU reduce


def multiple_input_with_kwargs_net(x1, x2, params, x3=10.0):
    """JAX wrapper mirroring MultipleInputWithKwargsNet.forward(x1, x2, x3=10)."""
    w1, b1, w2, b2 = params
    batch = x1.shape[0]

    # Fold both biases and the scalar kwarg x3 into one SMEM scalar.
    bias = jnp.asarray(b1 + b2 + x3, dtype=jnp.float32).reshape(1)

    # Lane-dense layout: batch on the 128-lane axis, features on sublanes.
    # Pad batch up to a full lane tile (and to the grid tile when batch is big).
    if batch <= _MAX_TB:
        tb = _round_up(batch, _LANE)
    else:
        tb = _MAX_TB
    padded = _round_up(batch, tb)
    pad = padded - batch

    x1t = jnp.pad(x1.astype(jnp.float32), ((0, pad), (0, 0))).T   # [IN, padded]
    x2t = jnp.pad(x2.astype(jnp.float32), ((0, pad), (0, 0))).T   # [IN, padded]

    grid = (padded // tb,)

    out = pl.pallas_call(
        _fused_linear_kernel,
        out_shape=jax.ShapeDtypeStruct((1, padded), jnp.float32),
        grid=grid,
        in_specs=[
            pl.BlockSpec(memory_space=pltpu.MemorySpace.SMEM),             # fused bias
            pl.BlockSpec((IN_FEATURES, tb), lambda i: (0, i)),              # x1^T tile
            pl.BlockSpec((IN_FEATURES, tb), lambda i: (0, i)),              # x2^T tile
            pl.BlockSpec((IN_FEATURES, OUT_FEATURES), lambda i: (0, 0)),    # w1 (resident)
            pl.BlockSpec((IN_FEATURES, OUT_FEATURES), lambda i: (0, 0)),    # w2 (resident)
        ],
        out_specs=pl.BlockSpec((1, tb), lambda i: (0, i)),
        compiler_params=pltpu.CompilerParams(
            dimension_semantics=("parallel",),
        ),
    )(bias, x1t, x2t, w1, w2)

    # Back to the PyTorch [batch, 1] output layout (drop lane padding).
    return out[0, :batch].reshape(batch, OUT_FEATURES)


def init_params(key):
    """Deterministic Linear(10, 1) params (PyTorch-style uniform init)."""
    k1, k2, k3, k4 = jax.random.split(key, 4)
    bound = 1.0 / jnp.sqrt(jnp.float32(IN_FEATURES))
    # Weights stored as [in_features, out_features] (transposed vs torch's [out, in]).
    w1 = jax.random.uniform(k1, (IN_FEATURES, OUT_FEATURES), jnp.float32, -bound, bound)
    b1 = jax.random.uniform(k2, (1, OUT_FEATURES), jnp.float32, -bound, bound)
    w2 = jax.random.uniform(k3, (IN_FEATURES, OUT_FEATURES), jnp.float32, -bound, bound)
    b2 = jax.random.uniform(k4, (1, OUT_FEATURES), jnp.float32, -bound, bound)
    return w1, b1, w2, b2


if __name__ == "__main__":
    key = jax.random.PRNGKey(0)
    kp, kx1, kx2 = jax.random.split(key, 3)

    params = init_params(kp)

    batch = 8
    x1 = jax.random.normal(kx1, (batch, IN_FEATURES), jnp.float32)
    x2 = jax.random.normal(kx2, (batch, IN_FEATURES), jnp.float32)
    x3 = 10.0  # default kwarg value from the PyTorch module

    out = multiple_input_with_kwargs_net(x1, x2, params, x3=x3)
    out = jax.block_until_ready(out)

    # Pure-JAX reference check.
    w1, b1, w2, b2 = params
    ref = x1 @ w1 + b1 + x2 @ w2 + b2 + x3
    assert out.shape == (batch, OUT_FEATURES)
    assert jnp.allclose(out, ref, atol=1e-5, rtol=1e-5)

    print("KERNEL_OK")
</pallas_src>

<mosaic_0001>
module attributes {stable_mosaic.version = 11 : i64} {
  func.func @_fused_linear_kernel(%arg0: i32, %arg1: memref<1xf32, #tpu.memory_space<smem>>, %arg2: memref<10x128xf32, #tpu.memory_space<vmem>>, %arg3: memref<10x128xf32, #tpu.memory_space<vmem>>, %arg4: memref<10x1xf32, #tpu.memory_space<vmem>>, %arg5: memref<10x1xf32, #tpu.memory_space<vmem>>, %arg6: memref<1x128xf32, #tpu.memory_space<vmem>>) attributes {dimension_semantics = [#tpu.dimension_semantics<parallel>], iteration_bounds = array<i64: 1>, scalar_prefetch = 0 : i64, scratch_operands = 0 : i64, tpu.core_type = #tpu.core_type<tc>, window_params = [{transform_indices = @transform_0, window_bounds = array<i64: 1>}, {transform_indices = @transform_1, window_bounds = array<i64: 10, 128>}, {transform_indices = @transform_2, window_bounds = array<i64: 10, 128>}, {pipeline_mode = #tpu.pipeline_mode<synchronous>, transform_indices = @transform_3, window_bounds = array<i64: 10, 1>}, {pipeline_mode = #tpu.pipeline_mode<synchronous>, transform_indices = @transform_4, window_bounds = array<i64: 10, 1>}, {transform_indices = @transform_5, window_bounds = array<i64: 1, 128>}]} {
    %c0 = arith.constant 0 : index
    %c0_0 = arith.constant 0 : index
    %0 = vector.load %arg2[%c0, %c0_0] : memref<10x128xf32, #tpu.memory_space<vmem>>, vector<10x128xf32>
    %c0_1 = arith.constant 0 : index
    %c0_2 = arith.constant 0 : index
    %1 = vector.load %arg4[%c0_1, %c0_2] : memref<10x1xf32, #tpu.memory_space<vmem>>, vector<10x1xf32>
    %2 = vector.broadcast %1 : vector<10x1xf32> to vector<10x128xf32>
    %3 = arith.mulf %0, %2 : vector<10x128xf32>
    %c0_3 = arith.constant 0 : index
    %c0_4 = arith.constant 0 : index
    %4 = vector.load %arg3[%c0_3, %c0_4] : memref<10x128xf32, #tpu.memory_space<vmem>>, vector<10x128xf32>
    %c0_5 = arith.constant 0 : index
    %c0_6 = arith.constant 0 : index
    %5 = vector.load %arg5[%c0_5, %c0_6] : memref<10x1xf32, #tpu.memory_space<vmem>>, vector<10x1xf32>
    %6 = vector.broadcast %5 : vector<10x1xf32> to vector<10x128xf32>
    %7 = arith.mulf %4, %6 : vector<10x128xf32>
    %8 = arith.addf %3, %7 : vector<10x128xf32>
    %cst = arith.constant dense<0.000000e+00> : vector<128xf32>
    %9 = vector.multi_reduction <add>, %8, %cst [0] : vector<10x128xf32> to vector<128xf32>
    %10 = vector.shape_cast %9 : vector<128xf32> to vector<1x128xf32>
    %c0_7 = arith.constant 0 : index
    %11 = memref.load %arg1[%c0_7] : memref<1xf32, #tpu.memory_space<smem>>
    %12 = vector.broadcast %11 : f32 to vector<1x128xf32>
    %13 = arith.addf %10, %12 : vector<1x128xf32>
    %c0_8 = arith.constant 0 : index
    %c0_9 = arith.constant 0 : index
    %14 = vector.load %arg6[%c0_8, %c0_9] : memref<1x128xf32, #tpu.memory_space<vmem>>, vector<1x128xf32>
    tpu.vector_store %arg6[%c0_8, %c0_9], %13 {strides = array<i32>} : memref<1x128xf32, #tpu.memory_space<vmem>>, vector<1x128xf32>,
    return
  }
  func.func @transform_0(%arg0: i32) -> i32 {
    %c0_i32 = arith.constant 0 : i32
    %c0_i32_0 = arith.constant 0 : i32
    return %c0_i32 : i32
  }
  func.func @transform_1(%arg0: i32) -> (i32, i32) {
    %c0_i32 = arith.constant 0 : i32
    %c0_i32_0 = arith.constant 0 : i32
    return %c0_i32, %arg0 : i32, i32
  }
  func.func @transform_2(%arg0: i32) -> (i32, i32) {
    %c0_i32 = arith.constant 0 : i32
    %c0_i32_0 = arith.constant 0 : i32
    return %c0_i32, %arg0 : i32, i32
  }
  func.func @transform_3(%arg0: i32) -> (i32, i32) {
    %c0_i32 = arith.constant 0 : i32
    %c0_i32_0 = arith.constant 0 : i32
    %c0_i32_1 = arith.constant 0 : i32
    return %c0_i32, %c0_i32_0 : i32, i32
  }
  func.func @transform_4(%arg0: i32) -> (i32, i32) {
    %c0_i32 = arith.constant 0 : i32
    %c0_i32_0 = arith.constant 0 : i32
    %c0_i32_1 = arith.constant 0 : i32
    return %c0_i32, %c0_i32_0 : i32, i32
  }
  func.func @transform_5(%arg0: i32) -> (i32, i32) {
    %c0_i32 = arith.constant 0 : i32
    %c0_i32_0 = arith.constant 0 : i32
    return %c0_i32, %arg0 : i32, i32
  }
}

</mosaic_0001>

<bundles_post_ra>
// kernel: tpu_custom_call.1
= control target key start
LH: loop header
LB: loop body
LE: loop exit
PB: predicated region body
PF: predicated region fallthrough
CT: control target
= control target key end

     0   :  { %v115_v2 = vmov 0   ;;  %s177_s0 = inlined_call_operand.<no memory space> [shape: f32[1], index: 0, kind: input, shape index: {}]   ;;  %s178_s1 = inlined_call_operand.vmem [shape: f32[10,128], index: 1, kind: input, shape index: {}]   ;;  %s179_s2 = inlined_call_operand.vmem [shape: f32[10,128], index: 2, kind: input, shape index: {}]   ;;  %s180_s3 = inlined_call_operand.vmem [shape: f32[10,1], index: 3, kind: input, shape index: {}]   ;;  %s181_s4 = inlined_call_operand.vmem [shape: f32[10,1], index: 4, kind: input, shape index: {}]   ;;  %s182_s5 = inlined_call_operand.hbm [shape: f32[1,128], index: 5, kind: output, shape index: {}]  }
   0x1   :  { %v25_v0 = vld [vmem:[%s180_s3 + $0x8] sm:$0x3]  ;;  %v24_v1 = vld [vmem:[%s180_s3] sm:$0xff]  ;;  %88 = vset.pattern.permute.xlu1 %v115_v2  ;;  %87 = vset.pattern.permute.xlu0 %v115_v2 }
   0x2   :  { %11 = vsyncpa [#allocation4], 0  ;;  %33 = vperm.xlu0 %87, %v25_v0   ;;  %28 = vperm.xlu1 %88, %v24_v1   ;;  %v41_v3 = vld [vmem:[%s181_s4 + $0x8] sm:$0x3]  ;;  %v40_v4 = vld [vmem:[%s181_s4] sm:$0xff]  ;;  %vm56_vm0 = vcmask 1041408   ;;  %v66_v26 = vstv %s177_s0 }
   0x3   :  { %v23_v7 = vld [vmem:[%s178_s1 + $0x8] sm:$0x3]  ;;  %v22_v8 = vld [vmem:[%s178_s1] sm:$0xff]  ;;  %s76_s11 = sshll.u32 %s182_s5, 4  ;;  %s77_s11 = int_to_ptr.hbm [resolvable:$true] %s76_s11 }
   0x4   :  { %v39_v9 = vld [vmem:[%s179_s2 + $0x8] sm:$0x3]  ;;  %v38_v10 = vld [vmem:[%s179_s2] sm:$0xff]  ;;  %s116_s2 = smov [#allocation3]  }
   0x5   :  { %s74_s8 = sshll.u32 %s116_s2, 4  ;;  %s75_s8 = int_to_ptr.vmem [resolvable:$true] %s74_s8 }
   0xa   :  { %49 = vperm.xlu0 %87, %v41_v3   ;;  %44 = vperm.xlu1 %88, %v40_v4  }
  0x74   :  { %v34_v5 = vpop.permute.xlu0 %33  ;;  %v29_v6 = vpop.permute.xlu1 %28 }
  0x75   :  { %v37_v13 = vmul.f32 %v34_v5, %v23_v7  ;;  %v36_v14 = vmul.f32 %v29_v6, %v22_v8 }
  0x7c   :  { %v50_v11 = vpop.permute.xlu0 %49  ;;  %v45_v12 = vpop.permute.xlu1 %44 }
  0x7d   :  { %v53_v15 = vmul.f32 %v50_v11, %v39_v9  ;;  %v52_v16 = vmul.f32 %v45_v12, %v38_v10 }
  0x7f   :  { %v55_v17 = vadd.f32 %v53_v15, %v37_v13  ;;  %v54_v18 = vadd.f32 %v52_v16, %v36_v14 }
  0x81   :  { %v57_v19 = vsel %vm56_vm0, %v55_v17, 0.0 }
  0x82   :  { %v58_v20 = vadd.f32 %v57_v19, %v54_v18 }
  0x84   :  { %v59_v21 = vrot.slane %v58_v20, 4 }
  0x86   :  { %v60_v22 = vadd.f32 %v59_v21, %v58_v20 }
  0x88   :  { %v61_v23 = vrot.slane %v60_v22, 2 }
  0x8a   :  { %v62_v24 = vadd.f32 %v61_v23, %v60_v22 }
  0x8c   :  { %v63_v25 = vrot.slane %v62_v24, 1 }
  0x8e   :  { %v64_v27 = vadd.f32 %v63_v25, %v62_v24 }
  0x90   :  { %v67_v28 = vadd.f32 %v66_v26, %v64_v27 }
  0x92   :  { %68 = vst [vmem:[#allocation3] sm:$0x1] %v67_v28 }
  0x93   :  { %79 = dma.vmem_to_hbm [thread:$0]  %s75_s8, 16, %s77_s11, [#allocation4]  }
  0x94   :  { %113 = dma.done.wait [#allocation4], 16  }
  0x95   :  { %114 = vsyncadd [#allocation4], 4294967280 }
  0x96   :  { %84 = vsyncpa [#allocation4], 1 }

</bundles_post_ra>
